<compile_context>
chip_gen: v7x
topology: tpu7x:2x2x1
jax: 0.10.0
libtpu: 0.0.40
codegen_flags: <defaults>
</compile_context>

<pallas_src>
import jax
import jax.numpy as jnp
from jax.experimental import pallas as pl
from jax.experimental.pallas import tpu as pltpu


def _conv2d_gemm_kernel(p_ref, w_ref, b_ref, o_ref):
    # p_ref: (M, K)      im2col patches  (M = N*Ho*Wo, K = KH*KW*Cin)
    # w_ref: (K, Cout)   flattened conv weights
    # b_ref: (1, Cout)   bias
    # o_ref: (M, Cout)   flat output slab
    acc = jnp.dot(p_ref[...], w_ref[...], preferred_element_type=jnp.float32)
    acc = acc + b_ref[...]                       # (1, Cout) broadcasts over M
    o_ref[...] = acc.astype(o_ref.dtype)


def conv2d_pallas(x_nchw, w_oihw, bias):
    """Forward pass of nn.Conv2d(3, 64, kernel_size=3) (valid conv, stride 1)."""
    N, Cin, H, W = x_nchw.shape
    Cout, Cin_w, KH, KW = w_oihw.shape
    assert Cin == Cin_w
    Ho, Wo = H - KH + 1, W - KW + 1
    M = N * Ho * Wo
    K = KH * KW * Cin

    # --- one-time layout glue (outside the kernel) -------------------------
    # NCHW -> NHWC, then im2col with tap order (kh, kw, cin).
    x_nhwc = jnp.transpose(x_nchw, (0, 2, 3, 1))           # (N, H, W, Cin)
    taps = [x_nhwc[:, kh:kh + Ho, kw:kw + Wo, :]
            for kh in range(KH) for kw in range(KW)]       # each (N,Ho,Wo,Cin)
    patches = jnp.stack(taps, axis=3).reshape(M, K)        # (M, K)
    # OIHW -> HWIO -> (K, Cout); constant transform, hoisted out of the kernel.
    w2d = jnp.transpose(w_oihw, (2, 3, 1, 0)).reshape(K, Cout)
    b2d = bias.reshape(1, Cout)

    out_flat = pl.pallas_call(
        _conv2d_gemm_kernel,
        out_shape=jax.ShapeDtypeStruct((M, Cout), x_nchw.dtype),
        grid_spec=pltpu.PrefetchScalarGridSpec(
            num_scalar_prefetch=0,
            grid=(1,),                                      # single grid step
            in_specs=[
                pl.BlockSpec((M, K), lambda i: (0, 0)),
                pl.BlockSpec((K, Cout), lambda i: (0, 0)),
                pl.BlockSpec((1, Cout), lambda i: (0, 0)),
            ],
            out_specs=pl.BlockSpec((M, Cout), lambda i: (0, 0)),
        ),
        compiler_params=pltpu.CompilerParams(
            dimension_semantics=("arbitrary",),
        ),
    )(patches, w2d, b2d)

    # Back to PyTorch NCHW convention.
    out_nhwc = out_flat.reshape(N, Ho, Wo, Cout)
    return jnp.transpose(out_nhwc, (0, 3, 1, 2))            # (N, Cout, Ho, Wo)


if __name__ == "__main__":
    key = jax.random.PRNGKey(0)
    k_x, k_w, k_b = jax.random.split(key, 3)

    # Module: nn.Conv2d(3, 64, kernel_size=3); small deterministic shapes.
    N, Cin, H, W = 2, 3, 16, 16
    Cout, KH, KW = 64, 3, 3

    x = jax.random.normal(k_x, (N, Cin, H, W), dtype=jnp.float32)
    # Deterministic synthetic parameters (Kaiming-uniform-like scale).
    fan_in = Cin * KH * KW
    bound = 1.0 / (fan_in ** 0.5)
    w = jax.random.uniform(k_w, (Cout, Cin, KH, KW), jnp.float32, -bound, bound)
    b = jax.random.uniform(k_b, (Cout,), jnp.float32, -bound, bound)

    out = conv2d_pallas(x, w, b)
    jax.block_until_ready(out)

    # Sanity check against XLA's conv (same semantics as the PyTorch module).
    ref = jax.lax.conv_general_dilated(
        x, w, window_strides=(1, 1), padding="VALID",
        dimension_numbers=("NCHW", "OIHW", "NCHW"),
    ) + b[None, :, None, None]
    assert out.shape == (N, Cout, H - KH + 1, W - KW + 1)
    assert jnp.allclose(out, ref, atol=1e-4, rtol=1e-4)

    print("KERNEL_OK")
</pallas_src>

<mosaic_0001>
module attributes {stable_mosaic.version = 11 : i64} {
  func.func @_conv2d_gemm_kernel(%arg0: i32, %arg1: memref<392x27xf32, #tpu.memory_space<vmem>>, %arg2: memref<27x64xf32, #tpu.memory_space<vmem>>, %arg3: memref<1x64xf32, #tpu.memory_space<vmem>>, %arg4: memref<392x64xf32, #tpu.memory_space<vmem>>) attributes {dimension_semantics = [#tpu.dimension_semantics<arbitrary>], iteration_bounds = array<i64: 1>, scalar_prefetch = 0 : i64, scratch_operands = 0 : i64, tpu.core_type = #tpu.core_type<tc>, window_params = [{pipeline_mode = #tpu.pipeline_mode<synchronous>, transform_indices = @transform_0, window_bounds = array<i64: 392, 27>}, {pipeline_mode = #tpu.pipeline_mode<synchronous>, transform_indices = @transform_1, window_bounds = array<i64: 27, 64>}, {pipeline_mode = #tpu.pipeline_mode<synchronous>, transform_indices = @transform_2, window_bounds = array<i64: 1, 64>}, {pipeline_mode = #tpu.pipeline_mode<synchronous>, transform_indices = @transform_3, window_bounds = array<i64: 392, 64>}]} {
    %c0 = arith.constant 0 : index
    %c0_0 = arith.constant 0 : index
    %0 = vector.load %arg1[%c0, %c0_0] : memref<392x27xf32, #tpu.memory_space<vmem>>, vector<392x27xf32>
    %c0_1 = arith.constant 0 : index
    %c0_2 = arith.constant 0 : index
    %1 = vector.load %arg2[%c0_1, %c0_2] : memref<27x64xf32, #tpu.memory_space<vmem>>, vector<27x64xf32>
    %cst = arith.constant dense<0.000000e+00> : vector<392x64xf32>
    %2 = tpu.matmul %0, %1, %cst {dimension_numbers = #tpu.dot_dimension_numbers<[1], [0], [0], [1], [0, 0, 1, 1], [], []>} : vector<392x27xf32>, vector<27x64xf32>, vector<392x64xf32> -> vector<392x64xf32>
    %c0_3 = arith.constant 0 : index
    %c0_4 = arith.constant 0 : index
    %3 = vector.load %arg3[%c0_3, %c0_4] : memref<1x64xf32, #tpu.memory_space<vmem>>, vector<1x64xf32>
    %4 = vector.broadcast %3 : vector<1x64xf32> to vector<392x64xf32>
    %5 = arith.addf %2, %4 : vector<392x64xf32>
    %c0_5 = arith.constant 0 : index
    %c0_6 = arith.constant 0 : index
    %6 = vector.load %arg4[%c0_5, %c0_6] : memref<392x64xf32, #tpu.memory_space<vmem>>, vector<392x64xf32>
    tpu.vector_store %arg4[%c0_5, %c0_6], %5 {strides = array<i32>} : memref<392x64xf32, #tpu.memory_space<vmem>>, vector<392x64xf32>,
    return
  }
  func.func @transform_0(%arg0: i32) -> (i32, i32) {
    %c0_i32 = arith.constant 0 : i32
    %c0_i32_0 = arith.constant 0 : i32
    %c0_i32_1 = arith.constant 0 : i32
    return %c0_i32, %c0_i32_0 : i32, i32
  }
  func.func @transform_1(%arg0: i32) -> (i32, i32) {
    %c0_i32 = arith.constant 0 : i32
    %c0_i32_0 = arith.constant 0 : i32
    %c0_i32_1 = arith.constant 0 : i32
    return %c0_i32, %c0_i32_0 : i32, i32
  }
  func.func @transform_2(%arg0: i32) -> (i32, i32) {
    %c0_i32 = arith.constant 0 : i32
    %c0_i32_0 = arith.constant 0 : i32
    %c0_i32_1 = arith.constant 0 : i32
    return %c0_i32, %c0_i32_0 : i32, i32
  }
  func.func @transform_3(%arg0: i32) -> (i32, i32) {
    %c0_i32 = arith.constant 0 : i32
    %c0_i32_0 = arith.constant 0 : i32
    %c0_i32_1 = arith.constant 0 : i32
    return %c0_i32, %c0_i32_0 : i32, i32
  }
}

</mosaic_0001>

<bundles_post_ra>
// kernel: tpu_custom_call.1
= control target key start
LH: loop header
LB: loop body
LE: loop exit
PB: predicated region body
PF: predicated region fallthrough
CT: control target
= control target key end

     0   :  { %v864_v0 = vmov 0.0|0.0   ;;  %vm222_vm0 = vcmask 1042432   ;;  %vm865_vm1 = vmmov 0   ;;  %v866_v6 = vmov 0.0   ;;  %s1444_s1 = inlined_call_operand.vmem [shape: f32[27,64], index: 1, kind: input, shape index: {}]   ;;  %s1445_s0 = inlined_call_operand.vmem [shape: f32[392,27], index: 0, kind: input, shape index: {}]   ;;  %s1446_s2 = inlined_call_operand.vmem [shape: f32[1,64], index: 2, kind: input, shape index: {}]   ;;  %s1447_s3 = inlined_call_operand.vmem [shape: f32[392,64], index: 3, kind: output, shape index: {}]  }
   0x1   :  { %849 = vmatprep.subr.bf16.mxu0 %v864_v0  ;;  %v63_v1 = vld [vmem:[%s1444_s1] sm:$0xff]  ;;  %v64_v2 = vld [vmem:[%s1444_s1 + $0x8] sm:$0xff]  ;;  %856 = vmatprep.subr.bf16.mxu1 %v864_v0  ;;  %v65_v3 = vld [vmem:[%s1444_s1 + $0x10] sm:$0xff]  ;;  %vm867_vm2 = vmmov 1   ;;  %vm74_vm4 = vcmask 220160   ;;  %vm536_vm5 = vcmask 523264  }
   0x2   :  { %v850_v4 = vpack.c.bf16 %v64_v2, %v63_v1  ;;  %v66_v5 = vld [vmem:[%s1444_s1 + $0x18] sm:$0x7]  ;;  %702 = vmatprep.mubr.msk.f32.mxu0 %vm865_vm1, %v866_v6  ;;  %777 = vmatprep.mubr.msk.f32.mxu1 %vm865_vm1, %v866_v6  ;;  %vm854_vm3 = vmpackc.low %vm222_vm0, %vm867_vm2  ;;  %v14_v8 = vld [vmem:[%s1445_s0] sm:$0xff] }
   0x3   :  { %v853_v7 = vpack.c.bf16 %v66_v5, %v65_v3  ;;  %v39_v9 = vld [vmem:[%s1445_s0 + $0xc8] sm:$0xff]  ;;  %v40_v11 = vld [vmem:[%s1445_s0 + $0xd0] sm:$0xff]  ;;  %v41_v13 = vld [vmem:[%s1445_s0 + $0xd8] sm:$0xff] }
   0x4   :  { %851 = vmatpush3.bf16.msra.mxu0 %v850_v4  ;;  %858 = vmatpush3.bf16.msra.mxu1 %v850_v4  ;;  %v15_v10 = vld [vmem:[%s1445_s0 + $0x8] sm:$0xff]  ;;  %v16_v12 = vld [vmem:[%s1445_s0 + $0x10] sm:$0xff]  ;;  %v17_v14 = vld [vmem:[%s1445_s0 + $0x18] sm:$0xff] }
   0x5   :  { %852 = vmatprep.subr.bf16.mxu0 %v864_v0  ;;  %857 = vmatprep.subr.bf16.mxu1 %v864_v0  ;;  %v42_v15 = vld [vmem:[%s1445_s0 + $0xe0] sm:$0xff]  ;;  %v43_v17 = vld [vmem:[%s1445_s0 + $0xe8] sm:$0xff]  ;;  %v44_v19 = vld [vmem:[%s1445_s0 + $0xf0] sm:$0xff] }
   0x6   :  { %v18_v16 = vld [vmem:[%s1445_s0 + $0x20] sm:$0xff]  ;;  %v19_v18 = vld [vmem:[%s1445_s0 + $0x28] sm:$0xff]  ;;  %v20_v20 = vld [vmem:[%s1445_s0 + $0x30] sm:$0xff] }
   0x7   :  { %v45_v21 = vld [vmem:[%s1445_s0 + $0xf8] sm:$0xff]  ;;  %v46_v23 = vld [vmem:[%s1445_s0 + $0x100] sm:$0xff]  ;;  %v47_v25 = vld [vmem:[%s1445_s0 + $0x108] sm:$0xff] }
   0x8   :  { %855 = vmatpush3.bf16.msk.msra.mxu0 %vm854_vm3, %v853_v7  ;;  %859 = vmatpush3.bf16.msk.msra.mxu1 %vm854_vm3, %v853_v7  ;;  %v21_v22 = vld [vmem:[%s1445_s0 + $0x38] sm:$0xff]  ;;  %v22_v24 = vld [vmem:[%s1445_s0 + $0x40] sm:$0xff]  ;;  %v23_v26 = vld [vmem:[%s1445_s0 + $0x48] sm:$0xff] }
   0x9   :  { %v48_v27 = vld [vmem:[%s1445_s0 + $0x110] sm:$0xff]  ;;  %v49_v29 = vld [vmem:[%s1445_s0 + $0x118] sm:$0xff]  ;;  %v50_v31 = vld [vmem:[%s1445_s0 + $0x120] sm:$0xff] }
   0xa   :  { %v24_v28 = vld [vmem:[%s1445_s0 + $0x50] sm:$0xff]  ;;  %v25_v30 = vld [vmem:[%s1445_s0 + $0x58] sm:$0xff]  ;;  %v26_v32 = vld [vmem:[%s1445_s0 + $0x60] sm:$0xff] }
   0xb   :  { %703 = vmatmul.mubr.msk.f32.vlgmr.msra.gmra.mrb[0].mxu0 %vm74_vm4, %v14_v8  ;;  %778 = vmatmul.mubr.msk.f32.vlgmr.msra.gmra.mrb[0].mxu1 %vm74_vm4, %v39_v9  ;;  %v51_v33 = vld [vmem:[%s1445_s0 + $0x128] sm:$0xff]  ;;  %v52_v35 = vld [vmem:[%s1445_s0 + $0x130] sm:$0xff]  ;;  %v53_v37 = vld [vmem:[%s1445_s0 + $0x138] sm:$0xff] }
   0xc   :  { %705 = vmatprep.mubr.msk.f32.mxu0 %vm865_vm1, %v866_v6  ;;  %780 = vmatprep.mubr.msk.f32.mxu1 %vm865_vm1, %v866_v6  ;;  %v27_v34 = vld [vmem:[%s1445_s0 + $0x68] sm:$0xff]  ;;  %v28_v36 = vld [vmem:[%s1445_s0 + $0x70] sm:$0xff]  ;;  %v29_v38 = vld [vmem:[%s1445_s0 + $0x78] sm:$0xff] }
   0xd   :  { %v54_v39 = vld [vmem:[%s1445_s0 + $0x140] sm:$0xff]  ;;  %v55_v41 = vld [vmem:[%s1445_s0 + $0x148] sm:$0xff]  ;;  %v56_v43 = vld [vmem:[%s1445_s0 + $0x150] sm:$0xff] }
   0xe   :  { %v30_v40 = vld [vmem:[%s1445_s0 + $0x80] sm:$0xff]  ;;  %v31_v42 = vld [vmem:[%s1445_s0 + $0x88] sm:$0xff]  ;;  %v32_v44 = vld [vmem:[%s1445_s0 + $0x90] sm:$0xff] }
   0xf   :  { %706 = vmatmul.mubr.msk.f32.gmra.mrb[2].mxu0 %vm74_vm4, %v15_v10  ;;  %781 = vmatmul.mubr.msk.f32.gmra.mrb[2].mxu1 %vm74_vm4, %v40_v11  ;;  %v57_v45 = vld [vmem:[%s1445_s0 + $0x158] sm:$0xff]  ;;  %v58_v47 = vld [vmem:[%s1445_s0 + $0x160] sm:$0xff]  ;;  %v59_v49 = vld [vmem:[%s1445_s0 + $0x168] sm:$0xff] }
  0x10   :  { %708 = vmatprep.mubr.msk.f32.mxu0 %vm865_vm1, %v866_v6  ;;  %783 = vmatprep.mubr.msk.f32.mxu1 %vm865_vm1, %v866_v6  ;;  %v33_v46 = vld [vmem:[%s1445_s0 + $0x98] sm:$0xff]  ;;  %v34_v48 = vld [vmem:[%s1445_s0 + $0xa0] sm:$0xff]  ;;  %v35_v50 = vld [vmem:[%s1445_s0 + $0xa8] sm:$0xff] }
  0x11   :  { %v60_v51 = vld [vmem:[%s1445_s0 + $0x170] sm:$0xff]  ;;  %v61_v53 = vld [vmem:[%s1445_s0 + $0x178] sm:$0xff]  ;;  %v62_v55 = vld [vmem:[%s1445_s0 + $0x180] sm:$0xff] }
  0x12   :  { %v36_v52 = vld [vmem:[%s1445_s0 + $0xb0] sm:$0xff]  ;;  %v37_v54 = vld [vmem:[%s1445_s0 + $0xb8] sm:$0xff]  ;;  %v38_v56 = vld [vmem:[%s1445_s0 + $0xc0] sm:$0xff] }
  0x13   :  { %709 = vmatmul.mubr.msk.f32.gmra.mrb[4].mxu0 %vm74_vm4, %v16_v12  ;;  %784 = vmatmul.mubr.msk.f32.gmra.mrb[4].mxu1 %vm74_vm4, %v41_v13  ;;  %v1197_v57 = vld [vmem:[%s1446_s2] ss:$0 sm:$0xff] }
  0x14   :  { %711 = vmatprep.mubr.msk.f32.mxu0 %vm865_vm1, %v866_v6  ;;  %786 = vmatprep.mubr.msk.f32.mxu1 %vm865_vm1, %v866_v6 }
  0x17   :  { %712 = vmatmul.mubr.msk.f32.gmra.mrb[6].mxu0 %vm74_vm4, %v17_v14  ;;  %787 = vmatmul.mubr.msk.f32.gmra.mrb[6].mxu1 %vm74_vm4, %v42_v15 }
  0x18   :  { %714 = vmatprep.mubr.msk.f32.mxu0 %vm865_vm1, %v866_v6  ;;  %789 = vmatprep.mubr.msk.f32.mxu1 %vm865_vm1, %v866_v6 }
  0x1b   :  { %715 = vmatmul.mubr.msk.f32.gmra.mrb[8].mxu0 %vm74_vm4, %v18_v16  ;;  %790 = vmatmul.mubr.msk.f32.gmra.mrb[8].mxu1 %vm74_vm4, %v43_v17 }
  0x1c   :  { %717 = vmatprep.mubr.msk.f32.mxu0 %vm865_vm1, %v866_v6  ;;  %792 = vmatprep.mubr.msk.f32.mxu1 %vm865_vm1, %v866_v6 }
  0x1f   :  { %718 = vmatmul.mubr.msk.f32.gmra.mrb[10].mxu0 %vm74_vm4, %v19_v18  ;;  %793 = vmatmul.mubr.msk.f32.gmra.mrb[10].mxu1 %vm74_vm4, %v44_v19 }
  0x20   :  { %720 = vmatprep.mubr.msk.f32.mxu0 %vm865_vm1, %v866_v6  ;;  %795 = vmatprep.mubr.msk.f32.mxu1 %vm865_vm1, %v866_v6 }
  0x23   :  { %721 = vmatmul.mubr.msk.f32.gmra.mrb[12].mxu0 %vm74_vm4, %v20_v20  ;;  %796 = vmatmul.mubr.msk.f32.gmra.mrb[12].mxu1 %vm74_vm4, %v45_v21 }
  0x24   :  { %723 = vmatprep.mubr.msk.f32.mxu0 %vm865_vm1, %v866_v6  ;;  %798 = vmatprep.mubr.msk.f32.mxu1 %vm865_vm1, %v866_v6 }
  0x27   :  { %724 = vmatmul.mubr.msk.f32.gmra.mrb[14].mxu0 %vm74_vm4, %v21_v22  ;;  %799 = vmatmul.mubr.msk.f32.gmra.mrb[14].mxu1 %vm74_vm4, %v46_v23 }
  0x28   :  { %726 = vmatprep.mubr.msk.f32.mxu0 %vm865_vm1, %v866_v6  ;;  %801 = vmatprep.mubr.msk.f32.mxu1 %vm865_vm1, %v866_v6 }
  0x2b   :  { %727 = vmatmul.mubr.msk.f32.gmra.mrb[16].mxu0 %vm74_vm4, %v22_v24  ;;  %802 = vmatmul.mubr.msk.f32.gmra.mrb[16].mxu1 %vm74_vm4, %v47_v25 }
  0x2c   :  { %729 = vmatprep.mubr.msk.f32.mxu0 %vm865_vm1, %v866_v6  ;;  %804 = vmatprep.mubr.msk.f32.mxu1 %vm865_vm1, %v866_v6 }
  0x2f   :  { %730 = vmatmul.mubr.msk.f32.gmra.mrb[18].mxu0 %vm74_vm4, %v23_v26  ;;  %805 = vmatmul.mubr.msk.f32.gmra.mrb[18].mxu1 %vm74_vm4, %v48_v27 }
  0x30   :  { %732 = vmatprep.mubr.msk.f32.mxu0 %vm865_vm1, %v866_v6  ;;  %807 = vmatprep.mubr.msk.f32.mxu1 %vm865_vm1, %v866_v6 }
  0x33   :  { %733 = vmatmul.mubr.msk.f32.gmra.mrb[20].mxu0 %vm74_vm4, %v24_v28  ;;  %808 = vmatmul.mubr.msk.f32.gmra.mrb[20].mxu1 %vm74_vm4, %v49_v29 }
  0x34   :  { %735 = vmatprep.mubr.msk.f32.mxu0 %vm865_vm1, %v866_v6  ;;  %810 = vmatprep.mubr.msk.f32.mxu1 %vm865_vm1, %v866_v6 }
  0x37   :  { %736 = vmatmul.mubr.msk.f32.gmra.mrb[22].mxu0 %vm74_vm4, %v25_v30  ;;  %811 = vmatmul.mubr.msk.f32.gmra.mrb[22].mxu1 %vm74_vm4, %v50_v31 }
  0x38   :  { %738 = vmatprep.mubr.msk.f32.mxu0 %vm865_vm1, %v866_v6  ;;  %813 = vmatprep.mubr.msk.f32.mxu1 %vm865_vm1, %v866_v6 }
  0x3b   :  { %739 = vmatmul.mubr.msk.f32.gmra.mrb[24].mxu0 %vm74_vm4, %v26_v32  ;;  %814 = vmatmul.mubr.msk.f32.gmra.mrb[24].mxu1 %vm74_vm4, %v51_v33 }
  0x3c   :  { %741 = vmatprep.mubr.msk.f32.mxu0 %vm865_vm1, %v866_v6  ;;  %816 = vmatprep.mubr.msk.f32.mxu1 %vm865_vm1, %v866_v6 }
  0x3f   :  { %742 = vmatmul.mubr.msk.f32.gmra.mrb[26].mxu0 %vm74_vm4, %v27_v34  ;;  %817 = vmatmul.mubr.msk.f32.gmra.mrb[26].mxu1 %vm74_vm4, %v52_v35 }
  0x40   :  { %744 = vmatprep.mubr.msk.f32.mxu0 %vm865_vm1, %v866_v6  ;;  %819 = vmatprep.mubr.msk.f32.mxu1 %vm865_vm1, %v866_v6 }
  0x43   :  { %745 = vmatmul.mubr.msk.f32.gmra.mrb[28].mxu0 %vm74_vm4, %v28_v36  ;;  %820 = vmatmul.mubr.msk.f32.gmra.mrb[28].mxu1 %vm74_vm4, %v53_v37 }
  0x44   :  { %747 = vmatprep.mubr.msk.f32.mxu0 %vm865_vm1, %v866_v6  ;;  %822 = vmatprep.mubr.msk.f32.mxu1 %vm865_vm1, %v866_v6 }
  0x47   :  { %748 = vmatmul.mubr.msk.f32.gmra.mrb[30].mxu0 %vm74_vm4, %v29_v38  ;;  %823 = vmatmul.mubr.msk.f32.gmra.mrb[30].mxu1 %vm74_vm4, %v54_v39 }
  0x48   :  { %750 = vmatprep.mubr.msk.f32.mxu0 %vm865_vm1, %v866_v6  ;;  %825 = vmatprep.mubr.msk.f32.mxu1 %vm865_vm1, %v866_v6 }
  0x4b   :  { %751 = vmatmul.mubr.msk.f32.gmra.mrb[32].mxu0 %vm74_vm4, %v30_v40  ;;  %826 = vmatmul.mubr.msk.f32.gmra.mrb[32].mxu1 %vm74_vm4, %v55_v41 }
  0x4c   :  { %753 = vmatprep.mubr.msk.f32.mxu0 %vm865_vm1, %v866_v6  ;;  %828 = vmatprep.mubr.msk.f32.mxu1 %vm865_vm1, %v866_v6 }
  0x4f   :  { %754 = vmatmul.mubr.msk.f32.gmra.mrb[34].mxu0 %vm74_vm4, %v31_v42  ;;  %829 = vmatmul.mubr.msk.f32.gmra.mrb[34].mxu1 %vm74_vm4, %v56_v43 }
  0x50   :  { %756 = vmatprep.mubr.msk.f32.mxu0 %vm865_vm1, %v866_v6  ;;  %831 = vmatprep.mubr.msk.f32.mxu1 %vm865_vm1, %v866_v6 }
  0x53   :  { %757 = vmatmul.mubr.msk.f32.gmra.mrb[36].mxu0 %vm74_vm4, %v32_v44  ;;  %832 = vmatmul.mubr.msk.f32.gmra.mrb[36].mxu1 %vm74_vm4, %v57_v45 }
  0x54   :  { %759 = vmatprep.mubr.msk.f32.mxu0 %vm865_vm1, %v866_v6  ;;  %834 = vmatprep.mubr.msk.f32.mxu1 %vm865_vm1, %v866_v6 }
  0x57   :  { %760 = vmatmul.mubr.msk.f32.gmra.mrb[38].mxu0 %vm74_vm4, %v33_v46  ;;  %835 = vmatmul.mubr.msk.f32.gmra.mrb[38].mxu1 %vm74_vm4, %v58_v47 }
  0x58   :  { %762 = vmatprep.mubr.msk.f32.mxu0 %vm865_vm1, %v866_v6  ;;  %837 = vmatprep.mubr.msk.f32.mxu1 %vm865_vm1, %v866_v6 }
  0x5b   :  { %763 = vmatmul.mubr.msk.f32.gmra.mrb[40].mxu0 %vm74_vm4, %v34_v48  ;;  %838 = vmatmul.mubr.msk.f32.gmra.mrb[40].mxu1 %vm74_vm4, %v59_v49 }
  0x5c   :  { %765 = vmatprep.mubr.msk.f32.mxu0 %vm865_vm1, %v866_v6  ;;  %840 = vmatprep.mubr.msk.f32.mxu1 %vm865_vm1, %v866_v6 }
  0x5f   :  { %766 = vmatmul.mubr.msk.f32.gmra.mrb[42].mxu0 %vm74_vm4, %v35_v50  ;;  %841 = vmatmul.mubr.msk.f32.gmra.mrb[42].mxu1 %vm74_vm4, %v60_v51 }
  0x60   :  { %768 = vmatprep.mubr.msk.f32.mxu0 %vm865_vm1, %v866_v6  ;;  %843 = vmatprep.mubr.msk.f32.mxu1 %vm865_vm1, %v866_v6 }
  0x63   :  { %769 = vmatmul.mubr.msk.f32.gmra.mrb[44].mxu0 %vm74_vm4, %v36_v52  ;;  %844 = vmatmul.mubr.msk.f32.gmra.mrb[44].mxu1 %vm74_vm4, %v61_v53 }
  0x64   :  { %771 = vmatprep.mubr.msk.f32.mxu0 %vm865_vm1, %v866_v6  ;;  %846 = vmatprep.mubr.msk.f32.mxu1 %vm865_vm1, %v866_v6 }
  0x67   :  { %772 = vmatmul.mubr.msk.f32.gmra.mrb[46].mxu0 %vm74_vm4, %v37_v54  ;;  %847 = vmatmul.mubr.msk.f32.gmra.mrb[46].mxu1 %vm74_vm4, %v62_v55 }
  0x68   :  { %774 = vmatprep.mubr.msk.f32.mxu0 %vm865_vm1, %v866_v6 }
  0x6b   :  { %775 = vmatmul.mubr.msk.f32.gmra.mrb[48].mxu0 %vm74_vm4, %v38_v56 }
  0xde   :  { %v292_v58 = vpop.f32.mrb[0].mxu0  ;;  %v417_v59 = vpop.f32.mrb[0].mxu1 }
  0xdf   :  { %v293_v60 = vadd.f32 %v1197_v57, %v292_v58  ;;  %v704_v61 = vpop.f32.mrb[1].mxu0  ;;  %v418_v62 = vadd.f32 %v1197_v57, %v417_v59  ;;  %v779_v63 = vpop.f32.mrb[1].mxu1 }
  0xe1   :  { %537 = vst.msk [vmem:[%s1447_s3] sm:$0xff] %vm536_vm5, %v293_v60  ;;  %562 = vst.msk [vmem:[%s1447_s3 + $0xc8] sm:$0xff] %vm536_vm5, %v418_v62 }
  0xe2   :  { %v297_v0 = vpop.f32.mrb[2].mxu0  ;;  %v422_v1 = vpop.f32.mrb[2].mxu1 }
  0xe3   :  { %v298_v2 = vadd.f32 %v1197_v57, %v297_v0  ;;  %v707_v3 = vpop.f32.mrb[3].mxu0  ;;  %v423_v4 = vadd.f32 %v1197_v57, %v422_v1  ;;  %v782_v5 = vpop.f32.mrb[3].mxu1 }
  0xe5   :  { %538 = vst.msk [vmem:[%s1447_s3 + $0x8] sm:$0xff] %vm536_vm5, %v298_v2  ;;  %563 = vst.msk [vmem:[%s1447_s3 + $0xd0] sm:$0xff] %vm536_vm5, %v423_v4 }
  0xe6   :  { %v302_v6 = vpop.f32.mrb[4].mxu0  ;;  %v427_v7 = vpop.f32.mrb[4].mxu1 }
  0xe7   :  { %v303_v8 = vadd.f32 %v1197_v57, %v302_v6  ;;  %v710_v9 = vpop.f32.mrb[5].mxu0  ;;  %v428_v10 = vadd.f32 %v1197_v57, %v427_v7  ;;  %v785_v11 = vpop.f32.mrb[5].mxu1 }
  0xe9   :  { %539 = vst.msk [vmem:[%s1447_s3 + $0x10] sm:$0xff] %vm536_vm5, %v303_v8  ;;  %564 = vst.msk [vmem:[%s1447_s3 + $0xd8] sm:$0xff] %vm536_vm5, %v428_v10 }
  0xea   :  { %v307_v12 = vpop.f32.mrb[6].mxu0  ;;  %v432_v13 = vpop.f32.mrb[6].mxu1 }
  0xeb   :  { %v308_v14 = vadd.f32 %v1197_v57, %v307_v12  ;;  %v713_v15 = vpop.f32.mrb[7].mxu0  ;;  %v433_v16 = vadd.f32 %v1197_v57, %v432_v13  ;;  %v788_v17 = vpop.f32.mrb[7].mxu1 }
  0xed   :  { %540 = vst.msk [vmem:[%s1447_s3 + $0x18] sm:$0xff] %vm536_vm5, %v308_v14  ;;  %565 = vst.msk [vmem:[%s1447_s3 + $0xe0] sm:$0xff] %vm536_vm5, %v433_v16 }
  0xee   :  { %v312_v18 = vpop.f32.mrb[8].mxu0  ;;  %v437_v19 = vpop.f32.mrb[8].mxu1 }
  0xef   :  { %v313_v20 = vadd.f32 %v1197_v57, %v312_v18  ;;  %v716_v21 = vpop.f32.mrb[9].mxu0  ;;  %v438_v22 = vadd.f32 %v1197_v57, %v437_v19  ;;  %v791_v23 = vpop.f32.mrb[9].mxu1 }
  0xf1   :  { %541 = vst.msk [vmem:[%s1447_s3 + $0x20] sm:$0xff] %vm536_vm5, %v313_v20  ;;  %566 = vst.msk [vmem:[%s1447_s3 + $0xe8] sm:$0xff] %vm536_vm5, %v438_v22 }
  0xf2   :  { %v317_v24 = vpop.f32.mrb[10].mxu0  ;;  %v442_v25 = vpop.f32.mrb[10].mxu1 }
  0xf3   :  { %v318_v26 = vadd.f32 %v1197_v57, %v317_v24  ;;  %v719_v27 = vpop.f32.mrb[11].mxu0  ;;  %v443_v28 = vadd.f32 %v1197_v57, %v442_v25  ;;  %v794_v29 = vpop.f32.mrb[11].mxu1 }
  0xf5   :  { %542 = vst.msk [vmem:[%s1447_s3 + $0x28] sm:$0xff] %vm536_vm5, %v318_v26  ;;  %567 = vst.msk [vmem:[%s1447_s3 + $0xf0] sm:$0xff] %vm536_vm5, %v443_v28 }
  0xf6   :  { %v322_v30 = vpop.f32.mrb[12].mxu0  ;;  %v447_v31 = vpop.f32.mrb[12].mxu1 }
  0xf7   :  { %v323_v32 = vadd.f32 %v1197_v57, %v322_v30  ;;  %v722_v33 = vpop.f32.mrb[13].mxu0  ;;  %v448_v34 = vadd.f32 %v1197_v57, %v447_v31  ;;  %v797_v35 = vpop.f32.mrb[13].mxu1 }
  0xf9   :  { %543 = vst.msk [vmem:[%s1447_s3 + $0x30] sm:$0xff] %vm536_vm5, %v323_v32  ;;  %568 = vst.msk [vmem:[%s1447_s3 + $0xf8] sm:$0xff] %vm536_vm5, %v448_v34 }
  0xfa   :  { %v327_v36 = vpop.f32.mrb[14].mxu0  ;;  %v452_v37 = vpop.f32.mrb[14].mxu1 }
  0xfb   :  { %v328_v38 = vadd.f32 %v1197_v57, %v327_v36  ;;  %v725_v39 = vpop.f32.mrb[15].mxu0  ;;  %v453_v40 = vadd.f32 %v1197_v57, %v452_v37  ;;  %v800_v41 = vpop.f32.mrb[15].mxu1 }
  0xfd   :  { %544 = vst.msk [vmem:[%s1447_s3 + $0x38] sm:$0xff] %vm536_vm5, %v328_v38  ;;  %569 = vst.msk [vmem:[%s1447_s3 + $0x100] sm:$0xff] %vm536_vm5, %v453_v40 }
  0xfe   :  { %v332_v42 = vpop.f32.mrb[16].mxu0  ;;  %v457_v43 = vpop.f32.mrb[16].mxu1 }
  0xff   :  { %v333_v44 = vadd.f32 %v1197_v57, %v332_v42  ;;  %v728_v45 = vpop.f32.mrb[17].mxu0  ;;  %v458_v46 = vadd.f32 %v1197_v57, %v457_v43  ;;  %v803_v47 = vpop.f32.mrb[17].mxu1 }
 0x101   :  { %545 = vst.msk [vmem:[%s1447_s3 + $0x40] sm:$0xff] %vm536_vm5, %v333_v44  ;;  %570 = vst.msk [vmem:[%s1447_s3 + $0x108] sm:$0xff] %vm536_vm5, %v458_v46 }
 0x102   :  { %v337_v48 = vpop.f32.mrb[18].mxu0  ;;  %v462_v49 = vpop.f32.mrb[18].mxu1 }
 0x103   :  { %v338_v50 = vadd.f32 %v1197_v57, %v337_v48  ;;  %v731_v51 = vpop.f32.mrb[19].mxu0  ;;  %v463_v52 = vadd.f32 %v1197_v57, %v462_v49  ;;  %v806_v53 = vpop.f32.mrb[19].mxu1 }
 0x105   :  { %546 = vst.msk [vmem:[%s1447_s3 + $0x48] sm:$0xff] %vm536_vm5, %v338_v50  ;;  %571 = vst.msk [vmem:[%s1447_s3 + $0x110] sm:$0xff] %vm536_vm5, %v463_v52 }
 0x106   :  { %v342_v54 = vpop.f32.mrb[20].mxu0  ;;  %v467_v55 = vpop.f32.mrb[20].mxu1 }
 0x107   :  { %v343_v56 = vadd.f32 %v1197_v57, %v342_v54  ;;  %v734_v58 = vpop.f32.mrb[21].mxu0  ;;  %v468_v59 = vadd.f32 %v1197_v57, %v467_v55  ;;  %v809_v60 = vpop.f32.mrb[21].mxu1 }
 0x109   :  { %547 = vst.msk [vmem:[%s1447_s3 + $0x50] sm:$0xff] %vm536_vm5, %v343_v56  ;;  %572 = vst.msk [vmem:[%s1447_s3 + $0x118] sm:$0xff] %vm536_vm5, %v468_v59 }
 0x10a   :  { %v347_v61 = vpop.f32.mrb[22].mxu0  ;;  %v472_v62 = vpop.f32.mrb[22].mxu1 }
 0x10b   :  { %v348_v63 = vadd.f32 %v1197_v57, %v347_v61  ;;  %v737_v0 = vpop.f32.mrb[23].mxu0  ;;  %v473_v1 = vadd.f32 %v1197_v57, %v472_v62  ;;  %v812_v2 = vpop.f32.mrb[23].mxu1 }
 0x10d   :  { %548 = vst.msk [vmem:[%s1447_s3 + $0x58] sm:$0xff] %vm536_vm5, %v348_v63  ;;  %573 = vst.msk [vmem:[%s1447_s3 + $0x120] sm:$0xff] %vm536_vm5, %v473_v1 }
 0x10e   :  { %v352_v3 = vpop.f32.mrb[24].mxu0  ;;  %v477_v4 = vpop.f32.mrb[24].mxu1 }
 0x10f   :  { %v353_v5 = vadd.f32 %v1197_v57, %v352_v3  ;;  %v740_v6 = vpop.f32.mrb[25].mxu0  ;;  %v478_v7 = vadd.f32 %v1197_v57, %v477_v4  ;;  %v815_v8 = vpop.f32.mrb[25].mxu1 }
 0x111   :  { %549 = vst.msk [vmem:[%s1447_s3 + $0x60] sm:$0xff] %vm536_vm5, %v353_v5  ;;  %574 = vst.msk [vmem:[%s1447_s3 + $0x128] sm:$0xff] %vm536_vm5, %v478_v7 }
 0x112   :  { %v357_v9 = vpop.f32.mrb[26].mxu0  ;;  %v482_v10 = vpop.f32.mrb[26].mxu1 }
 0x113   :  { %v358_v11 = vadd.f32 %v1197_v57, %v357_v9  ;;  %v743_v12 = vpop.f32.mrb[27].mxu0  ;;  %v483_v13 = vadd.f32 %v1197_v57, %v482_v10  ;;  %v818_v14 = vpop.f32.mrb[27].mxu1 }
 0x115   :  { %550 = vst.msk [vmem:[%s1447_s3 + $0x68] sm:$0xff] %vm536_vm5, %v358_v11  ;;  %575 = vst.msk [vmem:[%s1447_s3 + $0x130] sm:$0xff] %vm536_vm5, %v483_v13 }
 0x116   :  { %v362_v15 = vpop.f32.mrb[28].mxu0  ;;  %v487_v16 = vpop.f32.mrb[28].mxu1 }
 0x117   :  { %v363_v17 = vadd.f32 %v1197_v57, %v362_v15  ;;  %v746_v18 = vpop.f32.mrb[29].mxu0  ;;  %v488_v19 = vadd.f32 %v1197_v57, %v487_v16  ;;  %v821_v20 = vpop.f32.mrb[29].mxu1 }
 0x119   :  { %551 = vst.msk [vmem:[%s1447_s3 + $0x70] sm:$0xff] %vm536_vm5, %v363_v17  ;;  %576 = vst.msk [vmem:[%s1447_s3 + $0x138] sm:$0xff] %vm536_vm5, %v488_v19 }
 0x11a   :  { %v367_v21 = vpop.f32.mrb[30].mxu0  ;;  %v492_v22 = vpop.f32.mrb[30].mxu1 }
 0x11b   :  { %v368_v23 = vadd.f32 %v1197_v57, %v367_v21  ;;  %v749_v24 = vpop.f32.mrb[31].mxu0  ;;  %v493_v25 = vadd.f32 %v1197_v57, %v492_v22  ;;  %v824_v26 = vpop.f32.mrb[31].mxu1 }
 0x11d   :  { %552 = vst.msk [vmem:[%s1447_s3 + $0x78] sm:$0xff] %vm536_vm5, %v368_v23  ;;  %577 = vst.msk [vmem:[%s1447_s3 + $0x140] sm:$0xff] %vm536_vm5, %v493_v25 }
 0x11e   :  { %v372_v27 = vpop.f32.mrb[32].mxu0  ;;  %v497_v28 = vpop.f32.mrb[32].mxu1 }
 0x11f   :  { %v373_v29 = vadd.f32 %v1197_v57, %v372_v27  ;;  %v752_v30 = vpop.f32.mrb[33].mxu0  ;;  %v498_v31 = vadd.f32 %v1197_v57, %v497_v28  ;;  %v827_v32 = vpop.f32.mrb[33].mxu1 }
 0x121   :  { %553 = vst.msk [vmem:[%s1447_s3 + $0x80] sm:$0xff] %vm536_vm5, %v373_v29  ;;  %578 = vst.msk [vmem:[%s1447_s3 + $0x148] sm:$0xff] %vm536_vm5, %v498_v31 }
 0x122   :  { %v377_v33 = vpop.f32.mrb[34].mxu0  ;;  %v502_v34 = vpop.f32.mrb[34].mxu1 }
 0x123   :  { %v378_v35 = vadd.f32 %v1197_v57, %v377_v33  ;;  %v755_v36 = vpop.f32.mrb[35].mxu0  ;;  %v503_v37 = vadd.f32 %v1197_v57, %v502_v34  ;;  %v830_v38 = vpop.f32.mrb[35].mxu1 }
 0x125   :  { %554 = vst.msk [vmem:[%s1447_s3 + $0x88] sm:$0xff] %vm536_vm5, %v378_v35  ;;  %579 = vst.msk [vmem:[%s1447_s3 + $0x150] sm:$0xff] %vm536_vm5, %v503_v37 }
 0x126   :  { %v382_v39 = vpop.f32.mrb[36].mxu0  ;;  %v507_v40 = vpop.f32.mrb[36].mxu1 }
 0x127   :  { %v383_v41 = vadd.f32 %v1197_v57, %v382_v39  ;;  %v758_v42 = vpop.f32.mrb[37].mxu0  ;;  %v508_v43 = vadd.f32 %v1197_v57, %v507_v40  ;;  %v833_v44 = vpop.f32.mrb[37].mxu1 }
 0x129   :  { %555 = vst.msk [vmem:[%s1447_s3 + $0x90] sm:$0xff] %vm536_vm5, %v383_v41  ;;  %580 = vst.msk [vmem:[%s1447_s3 + $0x158] sm:$0xff] %vm536_vm5, %v508_v43 }
 0x12a   :  { %v387_v45 = vpop.f32.mrb[38].mxu0  ;;  %v512_v46 = vpop.f32.mrb[38].mxu1 }
 0x12b   :  { %v388_v47 = vadd.f32 %v1197_v57, %v387_v45  ;;  %v761_v48 = vpop.f32.mrb[39].mxu0  ;;  %v513_v49 = vadd.f32 %v1197_v57, %v512_v46  ;;  %v836_v50 = vpop.f32.mrb[39].mxu1 }
 0x12d   :  { %556 = vst.msk [vmem:[%s1447_s3 + $0x98] sm:$0xff] %vm536_vm5, %v388_v47  ;;  %581 = vst.msk [vmem:[%s1447_s3 + $0x160] sm:$0xff] %vm536_vm5, %v513_v49 }
 0x12e   :  { %v392_v51 = vpop.f32.mrb[40].mxu0  ;;  %v517_v52 = vpop.f32.mrb[40].mxu1 }
 0x12f   :  { %v393_v53 = vadd.f32 %v1197_v57, %v392_v51  ;;  %v764_v54 = vpop.f32.mrb[41].mxu0  ;;  %v518_v55 = vadd.f32 %v1197_v57, %v517_v52  ;;  %v839_v56 = vpop.f32.mrb[41].mxu1 }
 0x131   :  { %557 = vst.msk [vmem:[%s1447_s3 + $0xa0] sm:$0xff] %vm536_vm5, %v393_v53  ;;  %582 = vst.msk [vmem:[%s1447_s3 + $0x168] sm:$0xff] %vm536_vm5, %v518_v55 }
 0x132   :  { %v397_v58 = vpop.f32.mrb[42].mxu0  ;;  %v522_v59 = vpop.f32.mrb[42].mxu1 }
 0x133   :  { %v398_v60 = vadd.f32 %v1197_v57, %v397_v58  ;;  %v767_v61 = vpop.f32.mrb[43].mxu0  ;;  %v523_v62 = vadd.f32 %v1197_v57, %v522_v59  ;;  %v842_v63 = vpop.f32.mrb[43].mxu1 }
 0x135   :  { %558 = vst.msk [vmem:[%s1447_s3 + $0xa8] sm:$0xff] %vm536_vm5, %v398_v60  ;;  %583 = vst.msk [vmem:[%s1447_s3 + $0x170] sm:$0xff] %vm536_vm5, %v523_v62 }
 0x136   :  { %v402_v0 = vpop.f32.mrb[44].mxu0  ;;  %v527_v1 = vpop.f32.mrb[44].mxu1 }
 0x137   :  { %v403_v2 = vadd.f32 %v1197_v57, %v402_v0  ;;  %v770_v3 = vpop.f32.mrb[45].mxu0  ;;  %v528_v4 = vadd.f32 %v1197_v57, %v527_v1  ;;  %v845_v5 = vpop.f32.mrb[45].mxu1 }
 0x139   :  { %559 = vst.msk [vmem:[%s1447_s3 + $0xb0] sm:$0xff] %vm536_vm5, %v403_v2  ;;  %584 = vst.msk [vmem:[%s1447_s3 + $0x178] sm:$0xff] %vm536_vm5, %v528_v4 }
 0x13a   :  { %v407_v6 = vpop.f32.mrb[46].mxu0  ;;  %v532_v7 = vpop.f32.mrb[46].mxu1 }
 0x13b   :  { %v408_v8 = vadd.f32 %v1197_v57, %v407_v6  ;;  %v773_v9 = vpop.f32.mrb[47].mxu0  ;;  %v533_v10 = vadd.f32 %v1197_v57, %v532_v7  ;;  %v848_v11 = vpop.f32.mrb[47].mxu1 }
 0x13d   :  { %560 = vst.msk [vmem:[%s1447_s3 + $0xb8] sm:$0xff] %vm536_vm5, %v408_v8  ;;  %585 = vst.msk [vmem:[%s1447_s3 + $0x180] sm:$0xff] %vm536_vm5, %v533_v10 }
 0x13e   :  { %v412_v12 = vpop.f32.mrb[48].mxu0 }
 0x13f   :  { %v413_v13 = vadd.f32 %v1197_v57, %v412_v12  ;;  %v776_v14 = vpop.f32.mrb[49].mxu0 }
 0x141   :  { %561 = vst.msk [vmem:[%s1447_s3 + $0xc0] sm:$0xff] %vm536_vm5, %v413_v13 }

</bundles_post_ra>
